<compile_context>
chip_gen: v5e
topology: v5e:2x2
jax: 0.10.0
libtpu: 0.0.40
codegen_flags: <defaults>
</compile_context>

<pallas_src>
import math

import jax
import jax.numpy as jnp
from jax.experimental import pallas as pl
from jax.experimental.pallas import tpu as pltpu

_TWO_PI = 2.0 * math.pi


def _gfp_kernel(x_ref, w_ref, out_ref):
    # x_ref: (TB, 1) f32, w_ref: (1, E) f32 (2*pi already folded in),
    # out_ref: (TB, 2E) out_dtype.
    E = w_ref.shape[1]
    x_log = jnp.log(x_ref[...])                 # (TB, 1), EUP log
    x_proj = x_log * w_ref[...]                 # (TB, E) broadcast multiply on the VPU
    # Two lane-aligned half-slab stores (sin | cos), matching torch.cat(dim=-1).
    # Math stays f32; the cast is just a pack on store when out_dtype is bf16.
    out_ref[:, :E] = jnp.sin(x_proj).astype(out_ref.dtype)
    out_ref[:, E:] = jnp.cos(x_proj).astype(out_ref.dtype)


def make_gaussian_fourier_projection(W, *, block_b=2048, out_dtype=jnp.float32,
                                     min_pallas_batch=256):
    """Build a callable x:(B,) -> (B, 2*E) for a frozen Fourier weight W:(E,)."""
    E = int(W.shape[0])
    W_f32 = jnp.asarray(W, jnp.float32)
    # Frozen parameter: fold 2*pi into the resident (1, E) row ONCE, outside the
    # per-call path (removes a per-call zeros+scatter and a per-tile VPU multiply).
    w_scaled_2d = (W_f32 * _TWO_PI).reshape(1, E)
    lane_aligned = (E % 128 == 0)

    def _xla_path(x):
        # Plain-JAX fallback: tiny batches (launch overhead dominates) and E not a
        # multiple of 128 (would need masked stores / a full-result repack copy).
        x_proj = jnp.log(x.astype(jnp.float32))[:, None] * w_scaled_2d
        return jnp.concatenate([jnp.sin(x_proj), jnp.cos(x_proj)],
                               axis=-1).astype(out_dtype)

    def apply(x):
        B = int(x.shape[0])
        if (not lane_aligned) or B < min_pallas_batch:
            return _xla_path(x)

        # ---- batch tile sizing ----------------------------------------------
        B8 = ((B + 7) // 8) * 8
        # v7x: aim for >= 4 grid steps so dimension_semantics=("parallel",) can
        # shard the batch axis across both TensorCores.
        tb_split = (((B8 + 3) // 4) + 7) // 8 * 8
        TB = max(8, min(block_b, tb_split))
        # VMEM guard: per-step footprint ~ 2x double-buffered (TB, 2E) output
        # block + ~1x worth of f32 sin/cos/x_proj temporaries. Keep it under a
        # 24 MiB budget (32 MiB scoped default; v7x has only 64 MiB physical).
        per_row_bytes = 3 * (2 * E * 4)
        tb_vmem_cap = max(8, ((24 * 1024 * 1024) // per_row_bytes) // 8 * 8)
        TB = min(TB, tb_vmem_cap)

        B_pad = ((B + TB - 1) // TB) * TB
        # Padding rows use 1.0 so log() stays finite; sliced off below.
        x2d = jnp.ones((B_pad, 1), jnp.float32).at[:B, 0].set(x.astype(jnp.float32))

        out = pl.pallas_call(
            _gfp_kernel,
            out_shape=jax.ShapeDtypeStruct((B_pad, 2 * E), out_dtype),
            grid=(B_pad // TB,),
            in_specs=[
                pl.BlockSpec((TB, 1), lambda i: (i, 0)),    # batch tile of log-input
                pl.BlockSpec((1, E), lambda i: (0, 0)),     # W row resident across grid
            ],
            out_specs=pl.BlockSpec((TB, 2 * E), lambda i: (i, 0)),
            compiler_params=pltpu.CompilerParams(
                dimension_semantics=("parallel",)),          # shard rows across TCs
        )(x2d, w_scaled_2d)

        return out[:B] if B_pad != B else out

    return apply


if __name__ == "__main__":
    key = jax.random.PRNGKey(0)
    k_x, k_w, k_x2 = jax.random.split(key, 3)

    embedding_size = 256
    scale = 1.0

    # Frozen "parameter": W ~ N(0, 1) * scale (requires_grad=False in torch).
    W = jax.random.normal(k_w, (embedding_size,), dtype=jnp.float32) * scale

    # Case 1: small batch, forced through the Pallas kernel (exercises padding +
    # the single-step grid path).
    gfp_forced = make_gaussian_fourier_projection(W, min_pallas_batch=0)
    x_small = jax.random.uniform(k_x, (8,), dtype=jnp.float32, minval=0.01, maxval=10.0)
    out_small = jax.block_until_ready(gfp_forced(x_small))

    # Case 2: batch above the fallback threshold, default config -> multi-step
    # grid (TB=80, 4 steps) through the Pallas kernel with batch padding 300->320.
    gfp = make_gaussian_fourier_projection(W)
    x_big = jax.random.uniform(k_x2, (300,), dtype=jnp.float32, minval=0.01, maxval=10.0)
    out_big = jax.block_until_ready(gfp(x_big))

    # Reference in plain JAX (torch op order: log(x)*W then *2*pi).
    def ref(x):
        x_proj = jnp.log(x)[:, None] * W[None, :] * 2.0 * math.pi
        return jnp.concatenate([jnp.sin(x_proj), jnp.cos(x_proj)], axis=-1)

    assert out_small.shape == (8, 2 * embedding_size)
    assert out_big.shape == (300, 2 * embedding_size)
    # Tolerance covers the rounding-order difference from folding 2*pi into W.
    assert jnp.allclose(out_small, ref(x_small), atol=1e-4, rtol=1e-5)
    assert jnp.allclose(out_big, ref(x_big), atol=1e-4, rtol=1e-5)

    print("KERNEL_OK")
</pallas_src>

<mosaic_0001>
module attributes {stable_mosaic.version = 11 : i64} {
  func.func @_gfp_kernel(%arg0: i32, %arg1: memref<8x1xf32, #tpu.memory_space<vmem>>, %arg2: memref<1x256xf32, #tpu.memory_space<vmem>>, %arg3: memref<8x512xf32, #tpu.memory_space<vmem>>) attributes {dimension_semantics = [#tpu.dimension_semantics<parallel>], iteration_bounds = array<i64: 1>, scalar_prefetch = 0 : i64, scratch_operands = 0 : i64, tpu.core_type = #tpu.core_type<tc>, window_params = [{transform_indices = @transform_0, window_bounds = array<i64: 8, 1>}, {pipeline_mode = #tpu.pipeline_mode<synchronous>, transform_indices = @transform_1, window_bounds = array<i64: 1, 256>}, {transform_indices = @transform_2, window_bounds = array<i64: 8, 512>}]} {
    %c0 = arith.constant 0 : index
    %c0_0 = arith.constant 0 : index
    %0 = vector.load %arg1[%c0, %c0_0] : memref<8x1xf32, #tpu.memory_space<vmem>>, vector<8x1xf32>
    %1 = math.log %0 : vector<8x1xf32>
    %c0_1 = arith.constant 0 : index
    %c0_2 = arith.constant 0 : index
    %2 = vector.load %arg2[%c0_1, %c0_2] : memref<1x256xf32, #tpu.memory_space<vmem>>, vector<1x256xf32>
    %3 = vector.broadcast %1 : vector<8x1xf32> to vector<8x256xf32>
    %4 = vector.broadcast %2 : vector<1x256xf32> to vector<8x256xf32>
    %5 = arith.mulf %3, %4 : vector<8x256xf32>
    %6 = math.sin %5 : vector<8x256xf32>
    %c0_3 = arith.constant 0 : index
    %c0_4 = arith.constant 0 : index
    %7 = vector.load %arg3[%c0_3, %c0_4] : memref<8x512xf32, #tpu.memory_space<vmem>>, vector<8x256xf32>
    tpu.vector_store %arg3[%c0_3, %c0_4], %6 {strides = array<i32>} : memref<8x512xf32, #tpu.memory_space<vmem>>, vector<8x256xf32>,
    %8 = math.cos %5 : vector<8x256xf32>
    %c0_5 = arith.constant 0 : index
    %c256 = arith.constant 256 : index
    %9 = vector.load %arg3[%c0_5, %c256] : memref<8x512xf32, #tpu.memory_space<vmem>>, vector<8x256xf32>
    tpu.vector_store %arg3[%c0_5, %c256], %8 {strides = array<i32>} : memref<8x512xf32, #tpu.memory_space<vmem>>, vector<8x256xf32>,
    return
  }
  func.func @transform_0(%arg0: i32) -> (i32, i32) {
    %c0_i32 = arith.constant 0 : i32
    %c0_i32_0 = arith.constant 0 : i32
    return %arg0, %c0_i32 : i32, i32
  }
  func.func @transform_1(%arg0: i32) -> (i32, i32) {
    %c0_i32 = arith.constant 0 : i32
    %c0_i32_0 = arith.constant 0 : i32
    %c0_i32_1 = arith.constant 0 : i32
    return %c0_i32, %c0_i32_0 : i32, i32
  }
  func.func @transform_2(%arg0: i32) -> (i32, i32) {
    %c0_i32 = arith.constant 0 : i32
    %c0_i32_0 = arith.constant 0 : i32
    return %arg0, %c0_i32 : i32, i32
  }
}

</mosaic_0001>

<bundles_post_ra>
// kernel: tpu_custom_call.1
= control target key start
LH: loop header
LB: loop body
LE: loop exit
PB: predicated region body
PF: predicated region fallthrough
CT: control target
= control target key end

     0   :  { %s931_s0 = inlined_call_operand.vmem [shape: f32[8,1], index: 0, kind: input, shape index: {}]   ;;  %s932_s1 = inlined_call_operand.vmem [shape: f32[1,256], index: 1, kind: input, shape index: {}]   ;;  %s933_s2 = inlined_call_operand.hbm [shape: f32[8,512], index: 2, kind: output, shape index: {}]  }
   0x1   :  { %v12_v0 = vld [vmem:[%s931_s0] sm:$0xff] }
   0x2   :  { %7 = vsyncpa [#allocation3], 0  ;;  %v715_v1 = vmov 0   ;;  %687 = vlog2.f32 %v12_v0  ;;  %v15_v4 = vld [vmem:[%s932_s1] sm:$0x3]  ;;  %s722_s0 = smov [#allocation2]  }
   0x3   :  { %686 = vset.pattern.permute.xlu0 %v715_v1  ;;  %v22_v5 = vperm.slane %v15_v4, 0  ;;  %v23_v6 = vperm.slane %v15_v4, 1  ;;  %v716_v33 = vmov 683565275   ;;  %v717_v35 = vmov 2475754826  }
   0x4   :  { %v718_v39 = vmov 2131351028   ;;  %v719_v42 = vmov 2102212464   ;;  %v720_v45 = vmov 920167782  }
   0x5   :  { %v721_v48 = vmov 1326507024   ;;  %s655_s1 = sshll.u32 %s722_s0, 4  ;;  %s657_s15 = sshll.u32 %s933_s2, 4  ;;  %s656_s1 = int_to_ptr.vmem [resolvable:$true] %s655_s1  ;;  %s658_s15 = int_to_ptr.hbm [resolvable:$true] %s657_s15 }
   0x8   :  { %v688_v2 = vpop.eup %687 }
   0x9   :  { %v14_v3 = vmul.f32 0.6931472, %v688_v2 }
   0xb   :  { %18 = vperm.xlu0 %686, %v14_v3  }
  0x7d   :  { %v19_v7 = vpop.permute.xlu0 %18 }
  0x7e   :  { %v745_v8 = vmul.f32 %v22_v5, %v19_v7  ;;  %v747_v9 = vmul.f32 %v23_v6, %v19_v7 }
  0x80   :  { %v28_v10 = vand.u32 2147483647, %v745_v8  ;;  %v31_v11 = vand.u32 2139095040, %v745_v8  ;;  %v183_v12 = vand.u32 2147483647, %v747_v9  ;;  %v186_v13 = vand.u32 2139095040, %v747_v9 }
  0x82   :  { %v32_v14 = vshrl.u32 %v31_v11, 23  ;;  %v35_v15 = vand.u32 8388607, %v28_v10  ;;  %v187_v16 = vshrl.u32 %v186_v13, 23  ;;  %v190_v19 = vand.u32 8388607, %v183_v12 }
  0x84   :  { %v666_v17 = vadd.s32 4294967169, %v32_v14  ;;  %v36_v18 = vor.u32 8388608, %v35_v15  ;;  %v669_v20 = vadd.s32 4294967169, %v187_v16  ;;  %v191_v24 = vor.u32 8388608, %v190_v19 }
  0x86   :  { %v38_v21 = vadd.s32 1, %v666_v17  ;;  %v193_v22 = vadd.s32 1, %v669_v20  ;;  %v757_v23 = vshll.u32 %v36_v18, 8  ;;  %v764_v31 = vshll.u32 %v191_v24, 8 }
  0x88   :  { %vm39_vm0 = vcmp.gt.s32.totalorder %v38_v21, 0  ;;  %vm194_vm1 = vcmp.gt.s32.totalorder %v193_v22, 0  ;;  %v760_v29 = vand.u32 65535, %v757_v23  ;;  %v78_v37 = vshrl.u32 %v757_v23, 16 }
  0x89   :  { %v40_v25 = vsel %vm39_vm0, %v38_v21, 0  ;;  %v195_v27 = vsel %vm194_vm1, %v193_v22, 0 }
  0x8a   :  { %v42_v26 = vand.u32 31, %v40_v25  ;;  %v762_v30 = vand.u32 31, %v195_v27  ;;  %v766_v32 = vshrl.u32 %v40_v25, 5  ;;  %v804_v17 = vshrl.u32 %v195_v27, 5 }
  0x8c   :  { %v43_v28 = vsub.s32 32, %v42_v26  ;;  %v45_v34 = vshll.u32 %v716_v33, %v42_v26  ;;  %v48_v36 = vshll.u32 %v717_v35, %v42_v26  ;;  %v51_v41 = vshll.u32 %v718_v39, %v42_v26 }
  0x8d   :  { %v54_v44 = vshll.u32 %v719_v42, %v42_v26  ;;  %v57_v47 = vshll.u32 %v720_v45, %v42_v26  ;;  %v776_v53 = vsub.s32 32, %v762_v30  ;;  %vm60_vm2 = vcmp.lt.s32.totalorder %v766_v32, 1 }
  0x8e   :  { %v46_v38 = vshrl.u32 %v717_v35, %v43_v28  ;;  %v49_v40 = vshrl.u32 %v718_v39, %v43_v28  ;;  %v52_v43 = vshrl.u32 %v719_v42, %v43_v28  ;;  %v55_v46 = vshrl.u32 %v720_v45, %v43_v28 }
  0x8f   :  { %v58_v49 = vshrl.u32 %v721_v48, %v43_v28  ;;  %vm61_vm3 = vcmp.lt.s32.totalorder %v766_v32, 2  ;;  %v44_v56 = vshrl.u32 %v716_v33, %v43_v28  ;;  %vm63_vm4 = vcmp.lt.s32.totalorder %v766_v32, 4 }
  0x90   :  { %v47_v50 = vor.u32 %v46_v38, %v45_v34  ;;  %v50_v51 = vor.u32 %v49_v40, %v48_v36  ;;  %v53_v52 = vor.u32 %v52_v43, %v51_v41  ;;  %v56_v54 = vor.u32 %v55_v46, %v54_v44 }
  0x91   :  { %v59_v55 = vor.u32 %v58_v49, %v57_v47  ;;  %vm62_vm5 = vcmp.lt.s32.totalorder %v766_v32, 3  ;;  %v200_v61 = vshll.u32 %v716_v33, %v762_v30  ;;  %v201_v2 = vshrl.u32 %v717_v35, %v776_v53 }
  0x92   :  { %v68_v57 = vsel %vm60_vm2, %v47_v50, %v50_v51  ;;  %v72_v58 = vsel %vm60_vm2, %v50_v51, %v53_v52  ;;  %v69_v59 = vsel %vm63_vm4, %v56_v54, 920167782  ;;  %v65_v62 = vsel %vm63_vm4, %v53_v52, 2102212464 }
  0x93   :  { %v73_v60 = vsel %vm63_vm4, %v59_v55, 1326507024  ;;  %v70_v63 = vsel %vm62_vm5, %v53_v52, %v69_v59  ;;  %v203_v5 = vshll.u32 %v717_v35, %v762_v30  ;;  %v204_v6 = vshrl.u32 %v718_v39, %v776_v53 }
  0x94   :  { %v74_v0 = vsel %vm62_vm5, %v56_v54, %v73_v60  ;;  %v71_v3 = vsel %vm61_vm3, %v68_v57, %v70_v63  ;;  %v64_v15 = vsel %vm60_vm2, %v44_v56, %v47_v50  ;;  %v66_v16 = vsel %vm62_vm5, %v50_v51, %v65_v62 }
  0x95   :  { %v75_v4 = vsel %vm61_vm3, %v72_v58, %v74_v0  ;;  %v101_v13 = vand.u32 65535, %v71_v3  ;;  %v102_v14 = vshrl.u32 %v71_v3, 16  ;;  %v806_v18 = vor.u32 %v201_v2, %v200_v61 }
  0x96   :  { %v79_v7 = vand.u32 65535, %v75_v4  ;;  %v80_v11 = vshrl.u32 %v75_v4, 16  ;;  %v809_v21 = vor.u32 %v204_v6, %v203_v5  ;;  %v207_v22 = vshrl.u32 %v719_v42, %v776_v53 }
  0x97   :  { %v104_v25 = vmul.u32 %v102_v14, %v760_v29  ;;  %v105_v26 = vmul.u32 %v101_v13, %v78_v37  ;;  %v206_v28 = vshll.u32 %v718_v39, %v762_v30  ;;  %v103_v35 = vmul.u32 %v101_v13, %v760_v29 }
  0x98   :  { %v82_v19 = vmul.u32 %v80_v11, %v760_v29  ;;  %v83_v20 = vmul.u32 %v79_v7, %v78_v37  ;;  %v81_v24 = vmul.u32 %v79_v7, %v760_v29  ;;  %v84_v34 = vmul.u32 %v80_v11, %v78_v37 }
  0x99   :  { %v106_v36 = vmul.u32 %v102_v14, %v78_v37  ;;  %v107_v43 = vshll.u32 %v104_v25, 16  ;;  %v109_v46 = vshll.u32 %v105_v26, 16  ;;  %v817_v47 = vor.u32 %v207_v22, %v206_v28 }
  0x9a   :  { %v85_v27 = vshll.u32 %v82_v19, 16  ;;  %v86_v38 = vshrl.u32 %v82_v19, 16  ;;  %v87_v40 = vshll.u32 %v83_v20, 16  ;;  %v88_v41 = vshrl.u32 %v83_v20, 16 }
  0x9b   :  { %vm111_vm7 = vc.u32 %v103_v35, %v107_v43  ;;  %v113_v50 = vadd.s32 %v107_v43, %v103_v35  ;;  %v210_v39 = vshrl.u32 %v720_v45, %v776_v53  ;;  %v209_v37 = vshll.u32 %v719_v42, %v762_v30 }
  0x9c   :  { %vm89_vm6 = vc.u32 %v81_v24, %v85_v27  ;;  %v91_v44 = vadd.s32 %v85_v27, %v81_v24  ;;  %v112_v29 = vsel %vm111_vm7, 1, %v715_v1  ;;  %v212_v55 = vshll.u32 %v720_v45, %v762_v30 }
  0x9d   :  { %v90_v49 = vsel %vm89_vm6, 1, %v715_v1  ;;  %v114_v54 = vadd.s32 %v112_v29, %v106_v36  ;;  %vm115_vm9 = vc.u32 %v113_v50, %v109_v46  ;;  %v211_v58 = vor.u32 %v210_v39, %v209_v37 }
  0x9e   :  { %v92_v51 = vadd.s32 %v90_v49, %v84_v34  ;;  %vm93_vm8 = vc.u32 %v91_v44, %v87_v40  ;;  %v116_v57 = vsel %vm115_vm9, 1, %v715_v1  ;;  %v213_v59 = vshrl.u32 %v721_v48, %v776_v53 }
  0x9f   :  { %v94_v52 = vsel %vm93_vm8, 1, %v715_v1  ;;  %v108_v60 = vshrl.u32 %v104_v25, 16  ;;  %v110_v61 = vshrl.u32 %v105_v26, 16  ;;  %v831_v62 = vadd.s32 %v113_v50, %v109_v46 }
  0xa0   :  { %v96_v56 = vadd.s32 %v94_v52, %v92_v51  ;;  %v118_v63 = vadd.s32 %v116_v57, %v114_v54  ;;  %v214_v0 = vor.u32 %v213_v59, %v212_v55  ;;  %vm215_vm10 = vcmp.lt.s32.totalorder %v804_v17, 1 }
  0xa1   :  { %vm218_vm11 = vcmp.lt.s32.totalorder %v804_v17, 4  ;;  %vm217_vm12 = vcmp.lt.s32.totalorder %v804_v17, 3  ;;  %v223_v30 = vsel %vm215_vm10, %v806_v18, %v809_v21  ;;  %vm216_vm13 = vcmp.lt.s32.totalorder %v804_v17, 2 }
  0xa2   :  { %v97_v42 = vadd.s32 %v96_v56, %v86_v38  ;;  %v119_v2 = vadd.s32 %v118_v63, %v108_v60  ;;  %v224_v45 = vsel %vm218_vm11, %v211_v58, 920167782  ;;  %v227_v4 = vsel %vm215_vm10, %v809_v21, %v817_v47 }
  0xa3   :  { %v225_v3 = vsel %vm217_vm12, %v817_v47, %v224_v45  ;;  %v67_v5 = vsel %vm61_vm3, %v64_v15, %v66_v16  ;;  %v228_v11 = vsel %vm218_vm11, %v214_v0, 1326507024  ;;  %v232_v14 = vand.u32 65535, %v764_v31 }
  0xa4   :  { %v842_v48 = vadd.s32 %v97_v42, %v88_v41  ;;  %v120_v6 = vadd.s32 %v119_v2, %v110_v61  ;;  %v226_v7 = vsel %vm216_vm13, %v223_v30, %v225_v3  ;;  %v229_v13 = vsel %vm217_vm12, %v211_v58, %v228_v11 }
  0xa5   :  { %v256_v19 = vand.u32 65535, %v226_v7  ;;  %v230_v32 = vsel %vm216_vm13, %v227_v4, %v229_v13  ;;  %v233_v15 = vshrl.u32 %v764_v31, 16  ;;  %v257_v16 = vshrl.u32 %v226_v7, 16 }
  0xa6   :  { %vm123_vm14 = vc.u32 %v842_v48, %v831_v62  ;;  %v124_v20 = vadd.s32 1, %v120_v6  ;;  %v121_v22 = vmul.u32 %v757_v23, %v67_v5  ;;  %v234_v24 = vand.u32 65535, %v230_v32 }
  0xa7   :  { %v235_v25 = vshrl.u32 %v230_v32, 16  ;;  %v259_v28 = vmul.u32 %v257_v16, %v232_v14  ;;  %v260_v34 = vmul.u32 %v256_v19, %v233_v15  ;;  %v258_v38 = vmul.u32 %v256_v19, %v232_v14 }
  0xa8   :  { %v125_v26 = vsel %vm123_vm14, %v124_v20, %v120_v6  ;;  %v238_v36 = vmul.u32 %v234_v24, %v233_v15  ;;  %v261_v40 = vmul.u32 %v257_v16, %v233_v15  ;;  %v236_v44 = vmul.u32 %v234_v24, %v232_v14 }
  0xa9   :  { %v126_v27 = vadd.s32 %v125_v26, %v121_v22  ;;  %v237_v35 = vmul.u32 %v235_v25, %v232_v14  ;;  %v262_v41 = vshll.u32 %v259_v28, 16  ;;  %v239_v46 = vmul.u32 %v235_v25, %v233_v15 }
  0xaa   :  { %v242_v50 = vshll.u32 %v238_v36, 16  ;;  %v264_v39 = vshll.u32 %v260_v34, 16  ;;  %v220_v56 = vsel %vm218_vm11, %v817_v47, 2102212464  ;;  %v199_v58 = vshrl.u32 %v716_v33, %v776_v53 }
  0xab   :  { %v127_v43 = vadd.s32 536870912, %v126_v27  ;;  %v240_v49 = vshll.u32 %v237_v35, 16  ;;  %vm266_vm15 = vc.u32 %v258_v38, %v262_v41  ;;  %v268_v51 = vadd.s32 %v262_v41, %v258_v38 }
  0xac   :  { %v267_v37 = vsel %vm266_vm15, 1, %v715_v1  ;;  %v241_v63 = vshrl.u32 %v237_v35, 16  ;;  %v219_v2 = vsel %vm215_vm10, %v199_v58, %v806_v18  ;;  %v221_v47 = vsel %vm217_vm12, %v809_v21, %v220_v56 }
  0xad   :  { %v867_v23 = vshrl.u32 %v127_v43, 30  ;;  %vm244_vm0 = vc.u32 %v236_v44, %v240_v49  ;;  %v246_v29 = vadd.s32 %v240_v49, %v236_v44  ;;  %v269_v54 = vadd.s32 %v267_v37, %v261_v40 }
  0xae   :  { %v245_v52 = vsel %vm244_vm0, 1, %v715_v1  ;;  %vm270_vm1 = vc.u32 %v268_v51, %v264_v39  ;;  %v263_v30 = vshrl.u32 %v259_v28, 16  ;;  %v243_v33 = vshrl.u32 %v238_v36, 16 }
  0xaf   :  { %v129_v55 = vshll.u32 %v867_v23, 30  ;;  %v247_v57 = vadd.s32 %v245_v52, %v239_v46  ;;  %vm248_vm2 = vc.u32 %v246_v29, %v242_v50  ;;  %v271_v60 = vsel %vm270_vm1, 1, %v715_v1 }
  0xb0   :  { %v249_v59 = vsel %vm248_vm2, 1, %v715_v1  ;;  %v273_v0 = vadd.s32 %v271_v60, %v269_v54  ;;  %v265_v3 = vshrl.u32 %v260_v34, 16  ;;  %v222_v7 = vsel %vm216_vm13, %v219_v2, %v221_v47 }
  0xb1   :  { %v130_v61 = vsub.s32 %v126_v27, %v129_v55  ;;  %v251_v42 = vadd.s32 %v249_v59, %v247_v57  ;;  %v272_v11 = vadd.s32 %v268_v51, %v264_v39  ;;  %v276_v21 = vmul.u32 %v764_v31, %v222_v7 }
  0xb2   :  { %v274_v4 = vadd.s32 %v273_v0, %v263_v30  ;;  %v122_v15 = vadd.s32 %v831_v62, %v842_v48  ;;  %vm30_vm7 = vcmp.lt.s32.totalorder %v745_v8, 0  ;;  %v152_v46 = vsub.s32 4, %v867_v23 }
  0xb3   :  { %vm131_vm3 = vcmp.lt.s32.totalorder %v130_v61, 0  ;;  %v132_v45 = vsub.s32 0, %v130_v61  ;;  %v252_v53 = vadd.s32 %v251_v42, %v241_v63  ;;  %vm897_vm8 = vcmp.le.f32.partialorder %v28_v10, 0.7853982 }
  0xb4   :  { %v275_v13 = vadd.s32 %v274_v4, %v265_v3  ;;  %v153_v37 = vsel %vm30_vm7, %v152_v46, %v867_v23  ;;  %vm185_vm10 = vcmp.lt.s32.totalorder %v747_v9, 0  ;;  %vm910_vm11 = vcmp.le.f32.partialorder %v183_v12, 0.7853982 }
  0xb5   :  { %v133_v1 = vsel %vm131_vm3, %v132_v45, %v130_v61  ;;  %v253_v5 = vadd.s32 %v252_v53, %v243_v33  ;;  %vm171_vm2 = vweird.f32 %v745_v8 }
  0xb6   :  { %v134_v6 = vclz %v133_v1  ;;  %v279_v14 = vadd.s32 1, %v275_v13 }
  0xb7   :  { %vm278_vm4 = vc.u32 %v253_v5, %v272_v11  ;;  %v277_v56 = vadd.s32 %v272_v11, %v253_v5 }
  0xb8   :  { %v667_v18 = vadd.s32 4294967294, %v134_v6  ;;  %v280_v19 = vsel %vm278_vm4, %v279_v14, %v275_v13 }
  0xb9   :  { %v281_v32 = vadd.s32 %v280_v19, %v276_v21 }
  0xba   :  { %vm668_vm5 = vcmp.lt.s32.totalorder %v667_v18, 0 }
  0xbb   :  { %v137_v20 = vsel %vm668_vm5, 0, %v667_v18  ;;  %v282_v24 = vadd.s32 536870912, %v281_v32 }
  0xbc   :  { %v138_v16 = vsub.s32 32, %v137_v20  ;;  %v142_v22 = vsub.s32 4294967266, %v137_v20  ;;  %v139_v25 = vshll.u32 %v130_v61, %v137_v20  ;;  %v155_v61 = vsel %vm897_vm8, 0, %v153_v37 }
  0xbd   :  { %v890_v28 = vshrl.u32 %v282_v24, 30  ;;  %v172_v33 = vadd.s32 3, %v155_v61  ;;  %v484_v6 = vand.u32 3, %v155_v61 }
  0xbe   :  { %v140_v17 = vshrl.u32 %v122_v15, %v138_v16  ;;  %v143_v26 = vadd.s32 127, %v142_v22 }
  0xbf   :  { %v284_v35 = vshll.u32 %v890_v28, 30  ;;  %v173_v13 = vand.u32 3, %v172_v33  ;;  %vm485_vm12 = vcmp.lt.s32.totalorder %v484_v6, 2  ;;  %vm486_vm13 = vcmp.eq.s32.totalorder %v484_v6, 0 }
  0xc0   :  { %v141_v34 = vor.u32 %v140_v17, %v139_v25  ;;  %v144_v27 = vshll.u32 %v143_v26, 23  ;;  %v307_v22 = vsub.s32 4, %v890_v28  ;;  %vm489_vm1 = vcmp.eq.s32.totalorder %v484_v6, 2 }
  0xc1   :  { %v285_v36 = vsub.s32 %v281_v32, %v284_v35  ;;  %vm174_vm14 = vcmp.lt.s32.totalorder %v173_v13, 2  ;;  %vm175_vm15 = vcmp.eq.s32.totalorder %v173_v13, 0  ;;  %vm178_vm0 = vcmp.eq.s32.totalorder %v173_v13, 2 }
  0xc2   :  { %v145_v31 = vor.u32 4788187, %v144_v27  ;;  %v148_v40 = vcvt.s32.f32 %v141_v34 }
  0xc3   :  { %vm286_vm6 = vcmp.lt.s32.totalorder %v285_v36, 0  ;;  %v287_v41 = vsub.s32 0, %v285_v36 }
  0xc4   :  { %v146_v38 = vand.u32 2147483647, %v145_v31 }
  0xc5   :  { %v288_v62 = vsel %vm286_vm6, %v287_v41, %v285_v36 }
  0xc6   :  { %v149_v43 = vmul.f32 %v148_v40, %v146_v38  ;;  %v289_v44 = vclz %v288_v62  ;;  %v308_v40 = vsel %vm185_vm10, %v307_v22, %v890_v28 }
  0xc7   :  { %v310_v62 = vsel %vm910_vm11, 0, %v308_v40 }
  0xc8   :  { %v150_v48 = vxor.u32 2147483648, %v149_v43  ;;  %v670_v39 = vadd.s32 4294967294, %v289_v44  ;;  %v327_v49 = vadd.s32 3, %v310_v62  ;;  %v638_v37 = vand.u32 3, %v310_v62 }
  0xca   :  { %v151_v50 = vsel %vm30_vm7, %v150_v48, %v149_v43  ;;  %vm671_vm9 = vcmp.lt.s32.totalorder %v670_v39, 0  ;;  %vm639_vm3 = vcmp.lt.s32.totalorder %v638_v37, 2  ;;  %vm640_vm4 = vcmp.eq.s32.totalorder %v638_v37, 0 }
  0xcb   :  { %v154_v51 = vsel %vm897_vm8, %v745_v8, %v151_v50  ;;  %v292_v52 = vsel %vm671_vm9, 0, %v670_v39  ;;  %vm643_vm8 = vcmp.eq.s32.totalorder %v638_v37, 2  ;;  %vm326_vm9 = vweird.f32 %v747_v9 }
  0xcc   :  { %v156_v29 = vmul.f32 %v154_v51, %v154_v51  ;;  %v293_v57 = vsub.s32 32, %v292_v52  ;;  %v297_v58 = vsub.s32 4294967266, %v292_v52  ;;  %v294_v63 = vshll.u32 %v285_v36, %v292_v52 }
  0xcd   :  { %v328_v52 = vand.u32 3, %v327_v49 }
  0xce   :  { %v157_v54 = vmul.f32 -0.001358992, %v156_v29  ;;  %v164_v55 = vmul.f32 -0.00019511016, %v156_v29  ;;  %v295_v60 = vshrl.u32 %v277_v56, %v293_v57  ;;  %v298_v42 = vadd.s32 127, %v297_v58 }
  0xcf   :  { %vm329_vm5 = vcmp.lt.s32.totalorder %v328_v52, 2  ;;  %vm330_vm6 = vcmp.eq.s32.totalorder %v328_v52, 0  ;;  %vm333_vm7 = vcmp.eq.s32.totalorder %v328_v52, 2 }
  0xd0   :  { %v158_v10 = vadd.f32 0.041655596, %v157_v54  ;;  %v165_v59 = vadd.f32 0.008332121, %v164_v55  ;;  %v296_v47 = vor.u32 %v295_v60, %v294_v63  ;;  %v299_v30 = vshll.u32 %v298_v42, 23 }
  0xd2   :  { %v159_v0 = vmul.f32 %v158_v10, %v156_v29  ;;  %v166_v2 = vmul.f32 %v165_v59, %v156_v29  ;;  %v300_v53 = vor.u32 4788187, %v299_v30  ;;  %v303_v5 = vcvt.s32.f32 %v296_v47 }
  0xd4   :  { %v160_v45 = vadd.f32 -0.4999988, %v159_v0  ;;  %v167_v23 = vadd.f32 -0.16666654, %v166_v2  ;;  %v301_v1 = vand.u32 2147483647, %v300_v53 }
  0xd6   :  { %v161_v3 = vmul.f32 %v160_v45, %v156_v29  ;;  %v168_v4 = vmul.f32 %v167_v23, %v156_v29  ;;  %v304_v18 = vmul.f32 %v303_v5, %v301_v1 }
  0xd8   :  { %v162_v7 = vadd.f32 1.0, %v161_v3  ;;  %v169_v11 = vadd.f32 1.0, %v168_v4  ;;  %v305_v20 = vxor.u32 2147483648, %v304_v18 }
  0xda   :  { %v170_v14 = vmul.f32 %v169_v11, %v154_v51  ;;  %v179_v21 = vxor.u32 2147483648, %v162_v7  ;;  %v306_v16 = vsel %vm185_vm10, %v305_v20, %v304_v18 }
  0xdb   :  { %v309_v12 = vsel %vm910_vm11, %v747_v9, %v306_v16 }
  0xdc   :  { %v176_v32 = vxor.u32 2147483648, %v170_v14  ;;  %v180_v15 = vsel %vm178_vm0, %v179_v21, %v170_v14  ;;  %v491_v17 = vsel %vm489_vm1, %v179_v21, %v170_v14  ;;  %v311_v34 = vmul.f32 %v309_v12, %v309_v12 }
  0xde   :  { %v177_v24 = vsel %vm175_vm15, %v162_v7, %v176_v32  ;;  %v488_v25 = vsel %vm486_vm13, %v162_v7, %v176_v32  ;;  %v312_v36 = vmul.f32 -0.001358992, %v311_v34  ;;  %v319_v38 = vmul.f32 -0.00019511016, %v311_v34 }
  0xdf   :  { %v181_v26 = vsel %vm174_vm14, %v177_v24, %v180_v15  ;;  %v492_v27 = vsel %vm485_vm12, %v488_v25, %v491_v17 }
  0xe0   :  { %v182_v35 = vsel %vm171_vm2, nan, %v181_v26  ;;  %v493_v31 = vsel %vm171_vm2, nan, %v492_v27  ;;  %v313_v41 = vadd.f32 0.041655596, %v312_v36  ;;  %v320_v43 = vadd.f32 0.008332121, %v319_v38 }
  0xe1   :  { %338 = vst [vmem:[#allocation2] sm:$0xff] %v182_v35 }
  0xe2   :  { %648 = vst [vmem:[#allocation2 + $0x10] sm:$0xff] %v493_v31  ;;  %v314_v8 = vmul.f32 %v313_v41, %v311_v34  ;;  %v321_v48 = vmul.f32 %v320_v43, %v311_v34 }
  0xe4   :  { %v315_v44 = vadd.f32 -0.4999988, %v314_v8  ;;  %v322_v46 = vadd.f32 -0.16666654, %v321_v48 }
  0xe6   :  { %v316_v50 = vmul.f32 %v315_v44, %v311_v34  ;;  %v323_v39 = vmul.f32 %v322_v46, %v311_v34 }
  0xe8   :  { %v317_v51 = vadd.f32 1.0, %v316_v50  ;;  %v324_v29 = vadd.f32 1.0, %v323_v39 }
  0xea   :  { %v325_v54 = vmul.f32 %v324_v29, %v309_v12  ;;  %v334_v55 = vxor.u32 2147483648, %v317_v51 }
  0xec   :  { %v331_v28 = vxor.u32 2147483648, %v325_v54  ;;  %v335_v57 = vsel %vm333_vm7, %v334_v55, %v325_v54  ;;  %v645_v10 = vsel %vm643_vm8, %v334_v55, %v325_v54 }
  0xee   :  { %v332_v56 = vsel %vm330_vm6, %v317_v51, %v331_v28  ;;  %v642_v58 = vsel %vm640_vm4, %v317_v51, %v331_v28 }
  0xef   :  { %v336_v59 = vsel %vm329_vm5, %v332_v56, %v335_v57  ;;  %v646_v60 = vsel %vm639_vm3, %v642_v58, %v645_v10 }
  0xf0   :  { %v337_v61 = vsel %vm326_vm9, nan, %v336_v59  ;;  %v647_v63 = vsel %vm326_vm9, nan, %v646_v60 }
  0xf1   :  { %339 = vst [vmem:[#allocation2 + $0x8] sm:$0xff] %v337_v61 }
  0xf2   :  { %649 = vst [vmem:[#allocation2 + $0x18] sm:$0xff] %v647_v63 }
  0xf3   :  { %660 = dma.vmem_to_hbm [thread:$0]  %s656_s1, 512, %s658_s15, [#allocation3]  }
  0xf4   :  { %713 = dma.done.wait [#allocation3], 512  }
  0xf5   :  { %714 = vsyncadd [#allocation3], 4294966784 }
  0xf6   :  { %665 = vsyncpa [#allocation3], 1 }

</bundles_post_ra>
